<compile_context>
chip_gen: v7x
topology: tpu7x:2x2x1
jax: 0.10.0
libtpu: 0.0.40
codegen_flags: <defaults>
</compile_context>

<pallas_src>
import functools

import jax
import jax.numpy as jnp
from jax.experimental import pallas as pl
from jax.experimental.pallas import tpu as pltpu


_SMALL_REL_MAX = 16          # <= this many relations: in-kernel select chain
_MIB = 1024 * 1024


def _round_up(a: int, b: int) -> int:
    return (a + b - 1) // b * b


def _vmem_plan() -> dict:
    """Generation-aware VMEM budget / scoped limit / megacore hint."""
    cap = None
    try:
        cap = int(getattr(pltpu.get_tpu_info(), "vmem_capacity_bytes", 0)) or None
    except Exception:
        cap = None
    if cap is not None and cap > 64 * _MIB:
        # v5e / v6e: 128 MiB physical VMEM, single TensorCore.
        return dict(budget=48 * _MIB, limit=64 * _MIB, multi_core=False)
    # v7x (64 MiB physical, 2 TCs) or unknown: stay conservative.
    return dict(budget=20 * _MIB, limit=32 * _MIB, multi_core=True)


def _pick_tile_e(E: int, C: int, *, n_streams: int, stream_itemsize: int,
                 vmem_budget_bytes: int, multi_core: bool) -> int:
    """Largest lane-aligned edge tile that fits the VMEM budget.

    Per padded edge column we pay roughly:
      * n_streams pipelined inputs x 2 buffers x C x itemsize
      * ~5 full-height f32 in-kernel temporaries (s, o, s*o, r, t*r)
      * edge_type / score / norm rows + slack
    """
    bytes_per_edge = n_streams * 2 * C * stream_itemsize + 5 * C * 4 + 64
    t = vmem_budget_bytes // bytes_per_edge
    t = max(128, min(8192, (t // 128) * 128))
    # Never bigger than the (padded) problem itself.
    t = min(t, max(128, _round_up(max(E, 1), 128)))
    if multi_core:
        # Keep >= ~4 grid steps so both v7x TensorCores get work.
        t = min(t, max(128, _round_up((E + 3) // 4, 128)))
    return t


def _normalized_product(s_ref, o_ref, training: bool):
    """t = norm(s) * norm(o) elementwise, in (C, tile_e) layout."""
    s = s_ref[...].astype(jnp.float32)                      # (C, tile_e)
    o = o_ref[...].astype(jnp.float32)
    t = s * o
    if training:
        # F.normalize(v, dim=1): v / max(||v||, 1e-12).  Fused: scale s*o once
        # by a (1, tile_e) row.  Two separate rsqrts so zero rows / zero
        # padding give 0 * 1e24 == 0 rather than 0 * inf == NaN (eps2^2 would
        # underflow in f32).
        eps2 = jnp.float32(1e-24)
        ss = jnp.sum(s * s, axis=0, keepdims=True)           # (1, tile_e)
        oo = jnp.sum(o * o, axis=0, keepdims=True)
        inv = (jax.lax.rsqrt(jnp.maximum(ss, eps2)) *
               jax.lax.rsqrt(jnp.maximum(oo, eps2)))
        t = t * inv
    return t


def _distmult_kernel_small_rel(rT_ref, et_ref, s_ref, o_ref, out_ref, *,
                               training: bool, n_relations: int):
    t = _normalized_product(s_ref, o_ref, training)          # (C, tile_e)
    et = et_ref[...]                                          # (1, tile_e) int32
    rT = rT_ref[...].astype(jnp.float32)                      # (C, n_rel), resident
    # Exact R_diagonal[edge_type] selection via an unrolled compare/select
    # chain on the VPU (no (n_rel, tile_e) temporaries, no MXU rounding).
    r = jnp.broadcast_to(rT[:, 0:1], t.shape)
    for k in range(1, n_relations):
        r = jnp.where(et == k, rT[:, k:k + 1], r)
    # Channel reduction over sublanes -> lane-dense (1, tile_e) output block.
    out_ref[...] = jnp.sum(t * r, axis=0, keepdims=True)


def _distmult_kernel_stream_rel(s_ref, o_ref, r_ref, out_ref, *, training: bool):
    t = _normalized_product(s_ref, o_ref, training)
    r = r_ref[...].astype(jnp.float32)                        # (C, tile_e)
    out_ref[...] = jnp.sum(t * r, axis=0, keepdims=True)


def distmult_decoder(x, R_diagonal, edge_index, edge_type, *,
                     training: bool = True, tile_e: int | None = None):
    """score[e] = sum_c norm(x[src[e]])_c * R[edge_type[e]]_c * norm(x[dst[e]])_c"""
    E = int(edge_index.shape[1])
    C = int(x.shape[1])
    n_relations = int(R_diagonal.shape[0])
    small_rel = n_relations <= _SMALL_REL_MAX

    plan = _vmem_plan()
    n_streams = 2 if small_rel else 3
    if tile_e is None:
        tile_e = _pick_tile_e(
            E, C, n_streams=n_streams,
            stream_itemsize=jnp.dtype(x.dtype).itemsize,
            vmem_budget_bytes=plan["budget"], multi_core=plan["multi_core"])
    E_pad = _round_up(max(E, 1), tile_e)
    pad = E_pad - E

    # --- XLA glue: gather directly into the (C, E) kernel layout -------------
    xT = x.T                                                  # (C, N), once
    sT = jnp.take(xT, edge_index[0, :], axis=1)               # (C, E), x.dtype
    oT = jnp.take(xT, edge_index[1, :], axis=1)               # (C, E)
    if pad:
        sT = jnp.pad(sT, ((0, 0), (0, pad)))                  # zero cols -> score 0
        oT = jnp.pad(oT, ((0, 0), (0, pad)))

    grid = (E_pad // tile_e,)
    compiler_params = pltpu.CompilerParams(
        dimension_semantics=("parallel",),
        vmem_limit_bytes=plan["limit"],
    )
    edge_block = pl.BlockSpec((C, tile_e), lambda i: (0, i))
    row_block = pl.BlockSpec((1, tile_e), lambda i: (0, i))

    if small_rel:
        et = edge_type.astype(jnp.int32)
        if pad:
            et = jnp.pad(et, (0, pad))                        # rel 0; cols are zero anyway
        et2 = et.reshape(1, E_pad)
        rT = R_diagonal.T                                     # (C, n_rel), stays in VMEM
        kernel = functools.partial(_distmult_kernel_small_rel,
                                   training=training, n_relations=n_relations)
        score = pl.pallas_call(
            kernel,
            out_shape=jax.ShapeDtypeStruct((1, E_pad), jnp.float32),
            grid_spec=pltpu.PrefetchScalarGridSpec(
                num_scalar_prefetch=0,
                grid=grid,
                in_specs=[
                    pl.BlockSpec((C, n_relations), lambda i: (0, 0)),   # R^T, resident
                    row_block,                                          # edge_type
                    edge_block,                                         # s^T
                    edge_block,                                         # o^T
                ],
                out_specs=row_block,
            ),
            compiler_params=compiler_params,
        )(rT, et2, sT, oT)
    else:
        # Exact wrapper-side relation-row gather, streamed like s/o.
        rTg = jnp.take(R_diagonal.T, edge_type, axis=1)       # (C, E)
        if pad:
            rTg = jnp.pad(rTg, ((0, 0), (0, pad)))
        kernel = functools.partial(_distmult_kernel_stream_rel, training=training)
        score = pl.pallas_call(
            kernel,
            out_shape=jax.ShapeDtypeStruct((1, E_pad), jnp.float32),
            grid_spec=pltpu.PrefetchScalarGridSpec(
                num_scalar_prefetch=0,
                grid=grid,
                in_specs=[edge_block, edge_block, edge_block],
                out_specs=row_block,
            ),
            compiler_params=compiler_params,
        )(sT, oT, rTg)

    return score[0, :E]


def _reference(x, R_diagonal, edge_index, edge_type, training=True):
    s = x[edge_index[0, :]]
    r = R_diagonal[edge_type]
    o = x[edge_index[1, :]]
    if training:
        eps = 1e-12
        s = s / jnp.maximum(jnp.linalg.norm(s, axis=1, keepdims=True), eps)
        o = o / jnp.maximum(jnp.linalg.norm(o, axis=1, keepdims=True), eps)
    return jnp.sum(s * r * o, axis=1)


def _make_case(key, n_nodes, n_channels, n_relations, n_edges):
    k_x, k_R, k_src, k_dst, k_rel = jax.random.split(key, 5)
    R = jax.random.normal(k_R, (n_relations, n_channels), dtype=jnp.float32)
    x = jax.random.normal(k_x, (n_nodes, n_channels), dtype=jnp.float32)
    src = jax.random.randint(k_src, (n_edges,), 0, n_nodes)
    dst = jax.random.randint(k_dst, (n_edges,), 0, n_nodes)
    edge_index = jnp.stack([src, dst], axis=0)                # (2, E)
    edge_type = jax.random.randint(k_rel, (n_edges,), 0, n_relations)
    return x, R, edge_index, edge_type


if __name__ == "__main__":
    key = jax.random.PRNGKey(0)
    k1, k2, k3 = jax.random.split(key, 3)

    # Case 1: small shapes matching the module (fresh nn.Module => training=True),
    # small relation vocabulary -> in-kernel select-chain path, single grid step.
    x, R, ei, et = _make_case(k1, n_nodes=16, n_channels=32, n_relations=4, n_edges=8)
    out = jax.block_until_ready(distmult_decoder(x, R, ei, et, training=True))
    ref = _reference(x, R, ei, et, training=True)
    assert out.shape == (8,)
    assert jnp.allclose(out, ref, atol=1e-5, rtol=1e-5)

    # Case 2: multi-step grid + edge padding + streamed relation-row path
    # (n_relations > 16), training=True.
    x, R, ei, et = _make_case(k2, n_nodes=64, n_channels=32, n_relations=24, n_edges=300)
    out = jax.block_until_ready(distmult_decoder(x, R, ei, et, training=True, tile_e=128))
    ref = _reference(x, R, ei, et, training=True)
    assert out.shape == (300,)
    assert jnp.allclose(out, ref, atol=1e-5, rtol=1e-5)

    # Case 3: eval mode (no normalisation branch).
    x, R, ei, et = _make_case(k3, n_nodes=16, n_channels=32, n_relations=4, n_edges=8)
    out = jax.block_until_ready(distmult_decoder(x, R, ei, et, training=False))
    ref = _reference(x, R, ei, et, training=False)
    assert jnp.allclose(out, ref, atol=1e-5, rtol=1e-5)

    print("KERNEL_OK")
</pallas_src>

<mosaic_0001>
module attributes {stable_mosaic.version = 11 : i64} {
  func.func @_distmult_kernel_small_rel(%arg0: i32, %arg1: memref<32x4xf32, #tpu.memory_space<vmem>>, %arg2: memref<1x128xi32, #tpu.memory_space<vmem>>, %arg3: memref<32x128xf32, #tpu.memory_space<vmem>>, %arg4: memref<32x128xf32, #tpu.memory_space<vmem>>, %arg5: memref<1x128xf32, #tpu.memory_space<vmem>>) attributes {dimension_semantics = [#tpu.dimension_semantics<parallel>], iteration_bounds = array<i64: 1>, scalar_prefetch = 0 : i64, scratch_operands = 0 : i64, tpu.core_type = #tpu.core_type<tc>, window_params = [{pipeline_mode = #tpu.pipeline_mode<synchronous>, transform_indices = @transform_0, window_bounds = array<i64: 32, 4>}, {transform_indices = @transform_1, window_bounds = array<i64: 1, 128>}, {transform_indices = @transform_2, window_bounds = array<i64: 32, 128>}, {transform_indices = @transform_3, window_bounds = array<i64: 32, 128>}, {transform_indices = @transform_4, window_bounds = array<i64: 1, 128>}]} {
    %c0 = arith.constant 0 : index
    %c0_0 = arith.constant 0 : index
    %0 = vector.load %arg3[%c0, %c0_0] : memref<32x128xf32, #tpu.memory_space<vmem>>, vector<32x128xf32>
    %c0_1 = arith.constant 0 : index
    %c0_2 = arith.constant 0 : index
    %1 = vector.load %arg4[%c0_1, %c0_2] : memref<32x128xf32, #tpu.memory_space<vmem>>, vector<32x128xf32>
    %2 = arith.mulf %0, %1 : vector<32x128xf32>
    %3 = arith.mulf %0, %0 : vector<32x128xf32>
    %cst = arith.constant dense<0.000000e+00> : vector<128xf32>
    %4 = vector.multi_reduction <add>, %3, %cst [0] : vector<32x128xf32> to vector<128xf32>
    %5 = vector.shape_cast %4 : vector<128xf32> to vector<1x128xf32>
    %6 = arith.mulf %1, %1 : vector<32x128xf32>
    %cst_3 = arith.constant dense<0.000000e+00> : vector<128xf32>
    %7 = vector.multi_reduction <add>, %6, %cst_3 [0] : vector<32x128xf32> to vector<128xf32>
    %8 = vector.shape_cast %7 : vector<128xf32> to vector<1x128xf32>
    %cst_4 = arith.constant 1.000000e-24 : f32
    %9 = vector.broadcast %cst_4 : f32 to vector<1x128xf32>
    %10 = arith.maximumf %5, %9 : vector<1x128xf32>
    %11 = math.rsqrt %10 : vector<1x128xf32>
    %cst_5 = arith.constant 1.000000e-24 : f32
    %12 = vector.broadcast %cst_5 : f32 to vector<1x128xf32>
    %13 = arith.maximumf %8, %12 : vector<1x128xf32>
    %14 = math.rsqrt %13 : vector<1x128xf32>
    %15 = arith.mulf %11, %14 : vector<1x128xf32>
    %16 = vector.broadcast %15 : vector<1x128xf32> to vector<32x128xf32>
    %17 = arith.mulf %2, %16 : vector<32x128xf32>
    %c0_6 = arith.constant 0 : index
    %c0_7 = arith.constant 0 : index
    %18 = vector.load %arg2[%c0_6, %c0_7] : memref<1x128xi32, #tpu.memory_space<vmem>>, vector<1x128xi32>
    %c0_8 = arith.constant 0 : index
    %c0_9 = arith.constant 0 : index
    %19 = vector.load %arg1[%c0_8, %c0_9] : memref<32x4xf32, #tpu.memory_space<vmem>>, vector<32x4xf32>
    %20 = vector.extract_strided_slice %19 {offsets = [0, 0], sizes = [32, 1], strides = [1, 1]} : vector<32x4xf32> to vector<32x1xf32>
    %21 = vector.shape_cast %20 : vector<32x1xf32> to vector<32x1xf32>
    %22 = vector.broadcast %21 : vector<32x1xf32> to vector<32x128xf32>
    %c1_i32 = arith.constant 1 : i32
    %23 = vector.broadcast %c1_i32 : i32 to vector<1x128xi32>
    %24 = arith.cmpi eq, %18, %23 : vector<1x128xi32>
    %25 = vector.extract_strided_slice %19 {offsets = [0, 1], sizes = [32, 1], strides = [1, 1]} : vector<32x4xf32> to vector<32x1xf32>
    %26 = vector.shape_cast %24 : vector<1x128xi1> to vector<1x128xi1>
    %27 = vector.broadcast %26 : vector<1x128xi1> to vector<32x128xi1>
    %28 = vector.shape_cast %25 : vector<32x1xf32> to vector<32x1xf32>
    %29 = vector.broadcast %28 : vector<32x1xf32> to vector<32x128xf32>
    %30 = arith.select %27, %29, %22 : vector<32x128xi1>, vector<32x128xf32>
    %c2_i32 = arith.constant 2 : i32
    %31 = vector.broadcast %c2_i32 : i32 to vector<1x128xi32>
    %32 = arith.cmpi eq, %18, %31 : vector<1x128xi32>
    %33 = vector.extract_strided_slice %19 {offsets = [0, 2], sizes = [32, 1], strides = [1, 1]} : vector<32x4xf32> to vector<32x1xf32>
    %34 = vector.shape_cast %32 : vector<1x128xi1> to vector<1x128xi1>
    %35 = vector.broadcast %34 : vector<1x128xi1> to vector<32x128xi1>
    %36 = vector.shape_cast %33 : vector<32x1xf32> to vector<32x1xf32>
    %37 = vector.broadcast %36 : vector<32x1xf32> to vector<32x128xf32>
    %38 = arith.select %35, %37, %30 : vector<32x128xi1>, vector<32x128xf32>
    %c3_i32 = arith.constant 3 : i32
    %39 = vector.broadcast %c3_i32 : i32 to vector<1x128xi32>
    %40 = arith.cmpi eq, %18, %39 : vector<1x128xi32>
    %41 = vector.extract_strided_slice %19 {offsets = [0, 3], sizes = [32, 1], strides = [1, 1]} : vector<32x4xf32> to vector<32x1xf32>
    %42 = vector.shape_cast %40 : vector<1x128xi1> to vector<1x128xi1>
    %43 = vector.broadcast %42 : vector<1x128xi1> to vector<32x128xi1>
    %44 = vector.shape_cast %41 : vector<32x1xf32> to vector<32x1xf32>
    %45 = vector.broadcast %44 : vector<32x1xf32> to vector<32x128xf32>
    %46 = arith.select %43, %45, %38 : vector<32x128xi1>, vector<32x128xf32>
    %47 = arith.mulf %17, %46 : vector<32x128xf32>
    %cst_10 = arith.constant dense<0.000000e+00> : vector<128xf32>
    %48 = vector.multi_reduction <add>, %47, %cst_10 [0] : vector<32x128xf32> to vector<128xf32>
    %49 = vector.shape_cast %48 : vector<128xf32> to vector<1x128xf32>
    %c0_11 = arith.constant 0 : index
    %c0_12 = arith.constant 0 : index
    %50 = vector.load %arg5[%c0_11, %c0_12] : memref<1x128xf32, #tpu.memory_space<vmem>>, vector<1x128xf32>
    tpu.vector_store %arg5[%c0_11, %c0_12], %49 {strides = array<i32>} : memref<1x128xf32, #tpu.memory_space<vmem>>, vector<1x128xf32>,
    return
  }
  func.func @transform_0(%arg0: i32) -> (i32, i32) {
    %c0_i32 = arith.constant 0 : i32
    %c0_i32_0 = arith.constant 0 : i32
    %c0_i32_1 = arith.constant 0 : i32
    return %c0_i32, %c0_i32_0 : i32, i32
  }
  func.func @transform_1(%arg0: i32) -> (i32, i32) {
    %c0_i32 = arith.constant 0 : i32
    %c0_i32_0 = arith.constant 0 : i32
    return %c0_i32, %arg0 : i32, i32
  }
  func.func @transform_2(%arg0: i32) -> (i32, i32) {
    %c0_i32 = arith.constant 0 : i32
    %c0_i32_0 = arith.constant 0 : i32
    return %c0_i32, %arg0 : i32, i32
  }
  func.func @transform_3(%arg0: i32) -> (i32, i32) {
    %c0_i32 = arith.constant 0 : i32
    %c0_i32_0 = arith.constant 0 : i32
    return %c0_i32, %arg0 : i32, i32
  }
  func.func @transform_4(%arg0: i32) -> (i32, i32) {
    %c0_i32 = arith.constant 0 : i32
    %c0_i32_0 = arith.constant 0 : i32
    return %c0_i32, %arg0 : i32, i32
  }
}

</mosaic_0001>

<bundles_post_ra>
// kernel: tpu_custom_call.1
= control target key start
LH: loop header
LB: loop body
LE: loop exit
PB: predicated region body
PF: predicated region fallthrough
CT: control target
= control target key end

     0   :  { %9 = vsyncpa [#allocation3], 0  ;;  %s447_s0 = inlined_call_operand.vmem [shape: f32[32,4], index: 0, kind: input, shape index: {}]   ;;  %s448_s1 = inlined_call_operand.vmem [shape: s32[1,128], index: 1, kind: input, shape index: {}]   ;;  %s449_s2 = inlined_call_operand.vmem [shape: f32[32,128], index: 2, kind: input, shape index: {}]   ;;  %s450_s3 = inlined_call_operand.hbm [shape: f32[32,128], index: 3, kind: input, shape index: {}]   ;;  %s451_s4 = inlined_call_operand.hbm [shape: f32[1,128], index: 4, kind: output, shape index: {}]  }
   0x1   :  { %10 = vsyncpa [#allocation4], 0  ;;  %s286_s15 = smov [#allocation2]   ;;  %s238_s19 = scalar_lea.hbm %s450_s3, 512 }
   0x2   :  { %s22_s16 = sshll.u32 %s286_s15, 4  ;;  %p239_p0 = scmp.ne.s32.totalorder %s450_s3, %s238_s19  ;;  %s23_s16 = int_to_ptr.vmem [resolvable:$true] %s22_s16 }
   0x3   :  { %p242_p1 = scmp.lt.u32.totalorder %s238_s19, %s450_s3 }
   0x5   :  { %p244_p2 = pnand %p242_p1, %p239_p0 }
   0x7   :  { %247 = shalt.err (!%p244_p2)
}
   0x8   :  { %s248_s24 = scalar_lea.vmem %s23_s16, 512  ;;  %p253_p4 = scmp.lt.s32.totalorder %s23_s16, %s23_s16 }
   0x9   :  { %p249_p3 = scmp.ne.s32.totalorder %s23_s16, %s248_s24  ;;  %p254_p5 = scmp.lt.s32.totalorder %s248_s24, %s248_s24 }
   0xb   :  { %p255_p6 = por %p254_p5, %p253_p4 }
   0xd   :  { %p256_p7 = pnand %p255_p6, %p249_p3 }
   0xf   :  { %259 = shalt.err (!%p256_p7)
}
  0x10   :  { %s287_s25 = smov 128   ;;  %s288_s26 = smov 8  }
  0x11   :  { %28 = dma.hbm_to_vmem [thread:$0]  %s450_s3, 512, %s23_s16, [#allocation3], %s287_s25, %s287_s25, %s288_s26  }
  0x12   :  { %282 = dma.done.wait [#allocation3], 512  }
  0x13   :  { %283 = vsyncadd [#allocation3], 4294966784  ;;  %v289_v0 = vmov 1   ;;  %v290_v1 = vmov 0   ;;  %v80_v2 = vld [vmem:[%s447_s0] sm:$0xff]  ;;  %v81_v3 = vld [vmem:[%s447_s0 + $0x8] sm:$0xff]  ;;  %v106_v49 = vlaneseq }
  0x14   :  { %223 = vset.pattern.permute.xlu1 %v289_v0  ;;  %222 = vset.pattern.permute.xlu0 %v290_v1  ;;  %v82_v4 = vld [vmem:[%s447_s0 + $0x10] sm:$0xff]  ;;  %v291_v5 = vmov 2   ;;  %v292_v6 = vmov 3   ;;  %v83_v7 = vld [vmem:[%s447_s0 + $0x18] sm:$0xff]  ;;  %v349_v8 = vld [vmem:[%s449_s2] sm:$0xff] }
  0x15   :  { %112 = vperm.xlu1 %223, %v80_v2   ;;  %86 = vperm.xlu0 %222, %v80_v2   ;;  %v354_v9 = vld [vmem:[%s449_s2 + $0x8] sm:$0xff]  ;;  %v356_v10 = vld [vmem:[#allocation2] sm:$0xff]  ;;  %v44_v12 = vmul.f32 %v349_v8, %v349_v8  ;;  %v365_v14 = vld [vmem:[%s449_s2 + $0x10] sm:$0xff]  ;;  %v107_v52 = vshrl.u32 %v106_v49, 7 }
  0x16   :  { %v37_v11 = vld [vmem:[#allocation2 + $0x8] sm:$0xff]  ;;  %v45_v13 = vmul.f32 %v354_v9, %v354_v9  ;;  %v57_v15 = vmul.f32 %v356_v10, %v356_v10  ;;  %v369_v17 = vld [vmem:[#allocation2 + $0x10] sm:$0xff]  ;;  %v46_v18 = vmul.f32 %v365_v14, %v365_v14  ;;  %v376_v20 = vld [vmem:[%s449_s2 + $0x18] sm:$0xff] }
  0x17   :  { %v58_v16 = vmul.f32 %v37_v11, %v37_v11  ;;  %v59_v21 = vmul.f32 %v369_v17, %v369_v17  ;;  %v380_v23 = vld [vmem:[#allocation2 + $0x18] sm:$0xff]  ;;  %v47_v24 = vmul.f32 %v376_v20, %v376_v20  ;;  %v79_v51 = vld [vmem:[%s448_s1] sm:$0x1]  ;;  %v108_v55 = vsub.s32 0, %v107_v52  ;;  %s293_s1 = smov [#allocation5]  }
  0x18   :  { %v48_v19 = vadd.f32 %v45_v13, %v44_v12  ;;  %v60_v26 = vmul.f32 %v380_v23, %v380_v23  ;;  %vm131_vm0 = vcmp.eq.s32.totalorder %v79_v51, 2  ;;  %vm104_vm1 = vcmp.eq.s32.totalorder %v79_v51, 1  ;;  %s205_s18 = sshll.u32 %s293_s1, 4  ;;  %s206_s18 = int_to_ptr.vmem [resolvable:$true] %s205_s18 }
  0x19   :  { %116 = vperm.xlu1 %223, %v81_v3   ;;  %91 = vperm.xlu0 %222, %v81_v3   ;;  %v61_v22 = vadd.f32 %v58_v16, %v57_v15  ;;  %v132_v56 = vsel %vm131_vm0, 1, %v290_v1  ;;  %vm158_vm2 = vcmp.eq.s32.totalorder %v79_v51, 3  ;;  %v105_v58 = vsel %vm104_vm1, 1, %v290_v1  ;;  %s260_s19 = scalar_lea.vmem %s206_s18, 16  ;;  %s264_s20 = scalar_lea.vmem %s206_s18, 32 }
  0x1a   :  { %v49_v25 = vadd.f32 %v48_v19, %v46_v18  ;;  %v136_v60 = vrot.slane %v132_v56, %v108_v55  ;;  %v159_v61 = vsel %vm158_vm2, 1, %v290_v1  ;;  %v109_v63 = vrot.slane %v105_v58, %v108_v55  ;;  %p261_p8 = scmp.ne.s32.totalorder %s206_s18, %s260_s19  ;;  %p265_p9 = scmp.lt.s32.totalorder %s206_s18, %s206_s18 }
  0x1b   :  { %v62_v27 = vadd.f32 %v61_v22, %v59_v21  ;;  %v40_v12 = vmul.f32 %v356_v10, %v349_v8  ;;  %v42_v21 = vmul.f32 %v369_v17, %v365_v14  ;;  %p266_p10 = scmp.lt.s32.totalorder %s264_s20, %s260_s19 }
  0x1c   :  { %v50_v28 = vadd.f32 %v49_v25, %v47_v24  ;;  %vm393_vm3 = vcmp.eq.s32.totalorder %v136_v60, 1  ;;  %vm397_vm4 = vcmp.eq.s32.totalorder %v109_v63, 1 }
  0x1d   :  { %224 = vset.pattern.permute.xlu1 %v291_v5  ;;  %226 = vset.pattern.permute.xlu0 %v289_v0  ;;  %v63_v29 = vadd.f32 %v62_v27, %v60_v26  ;;  %v43_v26 = vmul.f32 %v380_v23, %v376_v20  ;;  %p267_p11 = por %p266_p10, %p265_p9 }
  0x1e   :  { %143 = vperm.xlu1 %224, %v81_v3   ;;  %120 = vperm.xlu0 %226, %v82_v4   ;;  %v51_v30 = vrot.slane %v50_v28, 4 }
  0x1f   :  { %v64_v31 = vrot.slane %v63_v29, 4  ;;  %p268_p12 = pnand %p267_p11, %p261_p8 }
  0x20   :  { %v52_v32 = vadd.f32 %v51_v30, %v50_v28 }
  0x21   :  { %v65_v33 = vadd.f32 %v64_v31, %v63_v29 }
  0x22   :  { %225 = vset.pattern.permute.xlu1 %v290_v1  ;;  %227 = vset.pattern.permute.xlu0 %v291_v5  ;;  %v53_v34 = vrot.slane %v52_v32, 2 }
  0x23   :  { %96 = vperm.xlu1 %225, %v82_v4   ;;  %139 = vperm.xlu0 %227, %v80_v2   ;;  %v66_v35 = vrot.slane %v65_v33, 2 }
  0x24   :  { %v54_v37 = vadd.f32 %v53_v34, %v52_v32 }
  0x25   :  { %v67_v38 = vadd.f32 %v66_v35, %v65_v33 }
  0x26   :  { %v55_v40 = vrot.slane %v54_v37, 1 }
  0x27   :  { %228 = vset.pattern.permute.xlu1 %v292_v6  ;;  %147 = vperm.xlu0 %227, %v82_v4   ;;  %v68_v41 = vrot.slane %v67_v38, 1 }
  0x28   :  { %166 = vperm.xlu1 %228, %v80_v2   ;;  %v56_v44 = vadd.f32 %v55_v40, %v54_v37 }
  0x29   :  { %v69_v45 = vadd.f32 %v68_v41, %v67_v38 }
  0x2a   :  { %v70_v46 = vmax.f32 %v56_v44, 1e-24 }
  0x2b   :  { %231 = vset.pattern.permute.xlu0 %v292_v6  ;;  %v72_v48 = vmax.f32 %v69_v45, 1e-24 }
  0x2c   :  { %170 = vperm.xlu1 %228, %v81_v3   ;;  %174 = vperm.xlu0 %231, %v82_v4   ;;  %234 = vrsqrt.f32 %v70_v46  ;;  %v163_v3 = vrot.slane %v159_v61, %v108_v55  ;;  %v41_v4 = vmul.f32 %v37_v11, %v354_v9 }
  0x2d   :  { %236 = vrsqrt.f32 %v72_v48 }
  0x2e   :  { %vm407_vm5 = vcmp.eq.s32.totalorder %v163_v3, 1 }
  0x30   :  { %229 = vset.pattern.permute.xlu1 %v290_v1 }
  0x31   :  { %101 = vperm.xlu1 %229, %v83_v7  }
  0x35   :  { %230 = vset.pattern.permute.xlu1 %v289_v0 }
  0x36   :  { %124 = vperm.xlu1 %230, %v83_v7   ;;  %v235_v62 = vpop.eup %234 }
  0x37   :  { %v237_v0 = vpop.eup %236 }
  0x38   :  { %v74_v1 = vmul.f32 %v237_v0, %v235_v62 }
  0x3a   :  { %232 = vset.pattern.permute.xlu1 %v291_v5  ;;  %v76_v11 = vmul.f32 %v74_v1, %v41_v4  ;;  %v75_v10 = vmul.f32 %v74_v1, %v40_v12  ;;  %v77_v31 = vmul.f32 %v74_v1, %v42_v21  ;;  %v78_v32 = vmul.f32 %v74_v1, %v43_v26 }
  0x3b   :  { %151 = vperm.xlu1 %232, %v83_v7  }
  0x3f   :  { %233 = vset.pattern.permute.xlu1 %v292_v6 }
  0x40   :  { %178 = vperm.xlu1 %233, %v83_v7  }
  0x94   :  { %v113_v36 = vpop.permute.xlu1 %112  ;;  %v87_v42 = vpop.permute.xlu0 %86 }
  0x95   :  { %v127_v18 = vsel %vm397_vm4, %v113_v36, %v87_v42 }
  0x98   :  { %v117_v39 = vpop.permute.xlu1 %116  ;;  %v92_v50 = vpop.permute.xlu0 %91 }
  0x99   :  { %v128_v13 = vsel %vm397_vm4, %v117_v39, %v92_v50 }
  0x9d   :  { %v144_v43 = vpop.permute.xlu1 %143  ;;  %v121_v53 = vpop.permute.xlu0 %120 }
  0x9e   :  { %v155_v15 = vsel %vm393_vm3, %v144_v43, %v128_v13 }
  0xa2   :  { %v97_v47 = vpop.permute.xlu1 %96  ;;  %v140_v59 = vpop.permute.xlu0 %139 }
  0xa3   :  { %v154_v8 = vsel %vm393_vm3, %v140_v59, %v127_v18  ;;  %v129_v27 = vsel %vm397_vm4, %v121_v53, %v97_v47 }
  0xa6   :  { %v148_v7 = vpop.permute.xlu0 %147 }
  0xa7   :  { %v167_v54 = vpop.permute.xlu1 %166  ;;  %v156_v29 = vsel %vm393_vm3, %v148_v7, %v129_v27 }
  0xa8   :  { %v181_v22 = vsel %vm407_vm5, %v167_v54, %v154_v8 }
  0xa9   :  { %v185_v30 = vmul.f32 %v181_v22, %v75_v10 }
  0xab   :  { %v171_v57 = vpop.permute.xlu1 %170  ;;  %v175_v25 = vpop.permute.xlu0 %174 }
  0xac   :  { %v182_v19 = vsel %vm407_vm5, %v171_v57, %v155_v15  ;;  %v183_v14 = vsel %vm407_vm5, %v175_v25, %v156_v29 }
  0xad   :  { %v186_v24 = vmul.f32 %v182_v19, %v76_v11  ;;  %v187_v34 = vmul.f32 %v183_v14, %v77_v31 }
  0xaf   :  { %v189_v17 = vadd.f32 %v186_v24, %v185_v30 }
  0xb0   :  { %v102_v2 = vpop.permute.xlu1 %101 }
  0xb1   :  { %v190_v36 = vadd.f32 %v189_v17, %v187_v34 }
  0xb5   :  { %v125_v16 = vpop.permute.xlu1 %124 }
  0xb6   :  { %v130_v33 = vsel %vm397_vm4, %v125_v16, %v102_v2 }
  0xba   :  { %v152_v28 = vpop.permute.xlu1 %151 }
  0xbb   :  { %v157_v20 = vsel %vm393_vm3, %v152_v28, %v130_v33 }
  0xbf   :  { %v179_v23 = vpop.permute.xlu1 %178 }
  0xc0   :  { %v184_v35 = vsel %vm407_vm5, %v179_v23, %v157_v20 }
  0xc1   :  { %v188_v37 = vmul.f32 %v184_v35, %v78_v32 }
  0xc3   :  { %v191_v38 = vadd.f32 %v190_v36, %v188_v37 }
  0xc5   :  { %v192_v39 = vrot.slane %v191_v38, 4 }
  0xc7   :  { %v193_v40 = vadd.f32 %v192_v39, %v191_v38 }
  0xc9   :  { %v194_v41 = vrot.slane %v193_v40, 2 }
  0xcb   :  { %v195_v42 = vadd.f32 %v194_v41, %v193_v40 }
  0xcd   :  { %v196_v43 = vrot.slane %v195_v42, 1 }
  0xcf   :  { %v197_v44 = vadd.f32 %v196_v43, %v195_v42 }
  0xd1   :  { %198 = vst [vmem:[#allocation5] sm:$0x1] %v197_v44 }
  0xd2   :  { %271 = shalt.err (!%p268_p12)
}
  0xd3   :  { %s272_s23 = scalar_lea.hbm %s451_s4, 16 }
  0xd4   :  { %p273_p13 = scmp.ne.s32.totalorder %s451_s4, %s272_s23  ;;  %p276_p0 = scmp.lt.u32.totalorder %s272_s23, %s451_s4 }
  0xd6   :  { %p278_p1 = pnand %p276_p0, %p273_p13 }
  0xd8   :  { %281 = shalt.err (!%p278_p1)
}
  0xd9   :  { %208 = dma.vmem_to_hbm [thread:$0]  %s206_s18, 16, %s451_s4, [#allocation4]  }
  0xda   :  { %284 = dma.done.wait [#allocation4], 16  }
  0xdb   :  { %285 = vsyncadd [#allocation4], 4294967280 }
  0xdc   :  { %212 = vsyncpa [#allocation3], 1 }
  0xdd   :  { %213 = vsyncpa [#allocation4], 1 }

</bundles_post_ra>
